<compile_context>
chip_gen: v6e
topology: v6e:2x2x1
jax: 0.10.0
libtpu: 0.0.40
codegen_flags: <defaults>
</compile_context>

<pallas_src>
import functools

import jax
import jax.numpy as jnp
from jax import lax
from jax.experimental import pallas as pl
from jax.experimental.pallas import tpu as pltpu


# ----------------------------- kernels ------------------------------------- #

def _mse_bce_kernel(mels_ref, mo_ref, mop_ref, glog_ref, gtgt_ref,
                    mel_loss_ref, gate_loss_ref, acc_ref,
                    *, total_rows, tile_rows, n_mel_elems, n_gate_elems):
    i = pl.program_id(0)

    @pl.when(i == 0)
    def _():
        acc_ref[0] = jnp.float32(0.0)

    m = mels_ref[...].astype(jnp.float32)
    d1 = mo_ref[...].astype(jnp.float32) - m
    d2 = mop_ref[...].astype(jnp.float32) - m
    # MSE(out, mel) + MSE(post, mel) share the same denominator, so one
    # accumulator / one cross-lane reduce per step is enough.
    sq = d1 * d1 + d2 * d2

    if total_rows % tile_rows != 0:
        # Last block hangs over the array end; its padded rows are undefined,
        # so mask them out with a select (not a multiply: garbage may be NaN).
        valid = total_rows - i * tile_rows
        row_ids = lax.broadcasted_iota(jnp.int32, sq.shape, 0)
        sq = jnp.where(row_ids < valid, sq, 0.0)

    acc_ref[0] = acc_ref[0] + jnp.sum(sq)

    @pl.when(i == pl.num_programs(0) - 1)
    def _():
        mel_loss_ref[0, 0] = acc_ref[0] * jnp.float32(1.0 / n_mel_elems)

        # numerically stable BCE-with-logits, mean reduction (lane-dense [1, N])
        x = glog_ref[...].astype(jnp.float32)
        y = gtgt_ref[...].astype(jnp.float32)
        bce = jnp.maximum(x, 0.0) - x * y + jnp.log1p(jnp.exp(-jnp.abs(x)))
        gate_loss_ref[0, 0] = jnp.sum(bce) * jnp.float32(1.0 / n_gate_elems)


def _guided_attn_kernel(ilens_ref, olens_ref, att_ref, o_ref, acc_ref,
                        *, sigma, alpha, to_len, ti_len):
    b = pl.program_id(0)

    @pl.when(b == 0)
    def _():
        acc_ref[0] = jnp.float32(0.0)   # numerator: sum of w * att over non-pad
        acc_ref[1] = jnp.float32(0.0)   # denominator: #non-pad positions

    ilen = ilens_ref[b]
    olen = olens_ref[b]
    # Scalar reciprocals (clamped against zero lengths) keep divides off the
    # vector path; the exp() already uses the EUP slot.
    r_i = 1.0 / jnp.maximum(ilen, 1).astype(jnp.float32)
    r_o = 1.0 / jnp.maximum(olen, 1).astype(jnp.float32)

    out_idx = lax.broadcasted_iota(jnp.float32, (to_len, ti_len), 0)  # decoder step
    in_idx = lax.broadcasted_iota(jnp.float32, (to_len, ti_len), 1)   # encoder step
    inv_two_sigma2 = 1.0 / (2.0 * sigma * sigma)

    diff = in_idx * r_i - out_idx * r_o
    w = 1.0 - jnp.exp(-(diff * diff) * inv_two_sigma2)
    keep = (out_idx < olen.astype(jnp.float32)) & (in_idx < ilen.astype(jnp.float32))
    att = att_ref[...].astype(jnp.float32)
    acc_ref[0] = acc_ref[0] + jnp.sum(jnp.where(keep, w * att, 0.0))

    # Denominator counted on the (otherwise idle) scalar path.
    den_b = (jnp.clip(ilen, 0, ti_len) * jnp.clip(olen, 0, to_len)).astype(jnp.float32)
    acc_ref[1] = acc_ref[1] + den_b

    @pl.when(b == pl.num_programs(0) - 1)
    def _():
        o_ref[0, 0] = jnp.float32(alpha) * acc_ref[0] / acc_ref[1]


# ----------------------------- wrappers ------------------------------------ #

def _pick_row_tile(n_rows, n_cols, target_bytes=2 * 1024 * 1024, max_rows=512):
    """Row tile for streaming f32 [n_rows, n_cols]; multiple of 8 or full extent.

    Sized so one tile stays <= ~2 MiB: 3 inputs x 2 buffers = 12 MiB, inside
    the default scoped-VMEM limit on v5e/v6e/v7x while staying double-buffered.
    """
    if n_rows <= 8:
        return n_rows
    cap = max(8, min(max_rows, target_bytes // (4 * max(n_cols, 1))))
    cap = (cap // 8) * 8
    if cap >= n_rows:
        return n_rows
    return cap


def mel_and_gate_loss(mels2d, mels_out2d, mels_out_postnet2d, gate_logits, gate_targets):
    r, t = mels2d.shape
    tile = _pick_row_tile(r, t)
    grid = (pl.cdiv(r, tile),)
    kernel = functools.partial(
        _mse_bce_kernel,
        total_rows=r, tile_rows=tile,
        n_mel_elems=r * t, n_gate_elems=int(gate_logits.size))
    mel_spec = pl.BlockSpec((tile, t), lambda i: (i, 0))
    gate_spec = pl.BlockSpec(gate_logits.shape, lambda i: (0, 0))  # resident, tiny
    scalar_out = pl.BlockSpec((1, 1), lambda i: (0, 0),
                              memory_space=pltpu.MemorySpace.SMEM)
    mel_loss, gate_loss = pl.pallas_call(
        kernel,
        out_shape=(jax.ShapeDtypeStruct((1, 1), jnp.float32),
                   jax.ShapeDtypeStruct((1, 1), jnp.float32)),
        grid=grid,
        in_specs=[mel_spec, mel_spec, mel_spec, gate_spec, gate_spec],
        out_specs=(scalar_out, scalar_out),
        scratch_shapes=[pltpu.SMEM((1,), jnp.float32)],
        compiler_params=pltpu.CompilerParams(
            dimension_semantics=("arbitrary",)),
    )(mels2d, mels_out2d, mels_out_postnet2d, gate_logits, gate_targets)
    return mel_loss[0, 0], gate_loss[0, 0]


def guided_attention_loss(att_ws, ilens, olens, *, sigma, alpha):
    b, to_len, ti_len = att_ws.shape
    kernel = functools.partial(
        _guided_attn_kernel, sigma=float(sigma), alpha=float(alpha),
        to_len=to_len, ti_len=ti_len)
    out = pl.pallas_call(
        kernel,
        out_shape=jax.ShapeDtypeStruct((1, 1), jnp.float32),
        grid=(b,),
        in_specs=[pl.BlockSpec(memory_space=pltpu.MemorySpace.SMEM),
                  pl.BlockSpec(memory_space=pltpu.MemorySpace.SMEM),
                  pl.BlockSpec((None, to_len, ti_len), lambda i: (i, 0, 0))],
        out_specs=pl.BlockSpec((1, 1), lambda i: (0, 0),
                               memory_space=pltpu.MemorySpace.SMEM),
        scratch_shapes=[pltpu.SMEM((2,), jnp.float32)],
        compiler_params=pltpu.CompilerParams(
            dimension_semantics=("arbitrary",)),
    )(ilens.astype(jnp.int32), olens.astype(jnp.int32), att_ws)
    return out[0, 0]


class Tacotron2LossPallas:
    """JAX/Pallas port of Tacotron2Loss.forward (MSE + BCEWithLogits + guided attn)."""

    def __init__(self, n_frames_per_step: int, guided_sigma: float, guided_lambda: float):
        self.n_frames_per_step = int(n_frames_per_step)
        self.guided_sigma = float(guided_sigma)
        self.guided_lambda = float(guided_lambda)
        # TODO(synk): the PyTorch module caches guided-attn/pad masks across calls
        # (reset_always flag); these kernels are stateless and rebuild the masks
        # in-register each call (same numerics, no HBM mask tensors at all).

    def __call__(self, mels, gates, tokens_lengths, mel_lengths, mel_pad,
                 mels_out, mels_out_postnet, gates_out, alignments):
        bsz, n_mel, t_mel = mels.shape
        # Flatten mels to lane-dense 2D [B*n_mel, T_mel] for row-tiled streaming.
        mels2d = mels.reshape(bsz * n_mel, t_mel)
        mo2d = mels_out.reshape(bsz * n_mel, t_mel)
        mop2d = mels_out_postnet.reshape(bsz * n_mel, t_mel)
        # Keep gates lane-dense [1, N]; PyTorch's (-1,1) view doesn't change the mean.
        glog = gates_out.reshape(1, -1)
        gtgt = gates.reshape(1, -1)

        mel_loss, gate_loss = mel_and_gate_loss(mels2d, mo2d, mop2d, glog, gtgt)

        olens = (mel_lengths + mel_pad) // self.n_frames_per_step
        attn_loss = guided_attention_loss(
            alignments, tokens_lengths, olens,
            sigma=self.guided_sigma, alpha=self.guided_lambda)
        return mel_loss, gate_loss, attn_loss


# --------------------------- pure-JAX reference ----------------------------- #

def _reference(mels, gates, tokens_lengths, mel_lengths, mel_pad,
               mels_out, mels_out_postnet, gates_out, alignments,
               n_frames_per_step, sigma, alpha):
    mel_loss = jnp.mean((mels_out - mels) ** 2) + jnp.mean((mels_out_postnet - mels) ** 2)
    x = gates_out.reshape(-1).astype(jnp.float32)
    y = gates.reshape(-1).astype(jnp.float32)
    gate_loss = jnp.mean(jnp.maximum(x, 0.0) - x * y + jnp.log1p(jnp.exp(-jnp.abs(x))))

    olens = (mel_lengths + mel_pad) // n_frames_per_step
    b, to_len, ti_len = alignments.shape
    oi = jnp.arange(to_len, dtype=jnp.float32)[None, :, None]
    ii = jnp.arange(ti_len, dtype=jnp.float32)[None, None, :]
    il = tokens_lengths.astype(jnp.float32)[:, None, None]
    ol = olens.astype(jnp.float32)[:, None, None]
    w = 1.0 - jnp.exp(-((ii / il - oi / ol) ** 2) / (2.0 * sigma ** 2))
    keep = (oi < ol) & (ii < il)
    num = jnp.sum(jnp.where(keep, w * alignments, 0.0))
    den = jnp.sum(keep.astype(jnp.float32))
    return mel_loss, gate_loss, alpha * num / den


# ------------------------------- demo --------------------------------------- #

if __name__ == "__main__":
    key = jax.random.PRNGKey(0)
    k1, k2, k3, k4, k5, k6 = jax.random.split(key, 6)

    B, n_mel, T_mel = 2, 8, 16
    n_frames_per_step = 2
    mel_pad = 0
    T_dec = T_mel // n_frames_per_step          # 8 decoder steps
    T_enc = 8                                   # max token length

    mels = jax.random.normal(k1, (B, n_mel, T_mel), dtype=jnp.float32)
    mels_out = jax.random.normal(k2, (B, n_mel, T_mel), dtype=jnp.float32)
    mels_out_postnet = jax.random.normal(k3, (B, n_mel, T_mel), dtype=jnp.float32)

    gates = (jax.random.uniform(k4, (B, T_dec)) > 0.5).astype(jnp.float32)  # 0/1 targets
    gates_out = jax.random.normal(k5, (B, T_dec), dtype=jnp.float32)        # logits

    alignments = jax.nn.softmax(
        jax.random.normal(k6, (B, T_dec, T_enc), dtype=jnp.float32), axis=-1)

    tokens_lengths = jnp.array([8, 5], dtype=jnp.int32)   # max == T_enc
    mel_lengths = jnp.array([16, 12], dtype=jnp.int32)    # max//n_frames == T_dec

    loss_fn = Tacotron2LossPallas(
        n_frames_per_step=n_frames_per_step, guided_sigma=0.4, guided_lambda=1.0)

    mel_loss, gate_loss, attn_loss = loss_fn(
        mels, gates, tokens_lengths, mel_lengths, mel_pad,
        mels_out, mels_out_postnet, gates_out, alignments)
    jax.block_until_ready((mel_loss, gate_loss, attn_loss))

    ref_mel, ref_gate, ref_attn = _reference(
        mels, gates, tokens_lengths, mel_lengths, mel_pad,
        mels_out, mels_out_postnet, gates_out, alignments,
        n_frames_per_step, 0.4, 1.0)

    ok = (jnp.allclose(mel_loss, ref_mel, rtol=1e-4, atol=1e-5)
          and jnp.allclose(gate_loss, ref_gate, rtol=1e-4, atol=1e-5)
          and jnp.allclose(attn_loss, ref_attn, rtol=1e-4, atol=1e-5))
    if bool(ok):
        print("KERNEL_OK")
    else:
        print("MISMATCH", mel_loss, ref_mel, gate_loss, ref_gate, attn_loss, ref_attn)
</pallas_src>

<mosaic_0001>
module attributes {stable_mosaic.version = 11 : i64} {
  func.func @_mse_bce_kernel(%arg0: i32, %arg1: memref<16x16xf32, #tpu.memory_space<vmem>>, %arg2: memref<16x16xf32, #tpu.memory_space<vmem>>, %arg3: memref<16x16xf32, #tpu.memory_space<vmem>>, %arg4: memref<1x16xf32, #tpu.memory_space<vmem>>, %arg5: memref<1x16xf32, #tpu.memory_space<vmem>>, %arg6: memref<1x1xf32, #tpu.memory_space<smem>>, %arg7: memref<1x1xf32, #tpu.memory_space<smem>>, %arg8: memref<1xf32, #tpu.memory_space<smem>>) attributes {dimension_semantics = [#tpu.dimension_semantics<arbitrary>], iteration_bounds = array<i64: 1>, scalar_prefetch = 0 : i64, scratch_operands = 1 : i64, tpu.core_type = #tpu.core_type<tc>, window_params = [{transform_indices = @transform_0, window_bounds = array<i64: 16, 16>}, {transform_indices = @transform_1, window_bounds = array<i64: 16, 16>}, {transform_indices = @transform_2, window_bounds = array<i64: 16, 16>}, {pipeline_mode = #tpu.pipeline_mode<synchronous>, transform_indices = @transform_3, window_bounds = array<i64: 1, 16>}, {pipeline_mode = #tpu.pipeline_mode<synchronous>, transform_indices = @transform_4, window_bounds = array<i64: 1, 16>}, {transform_indices = @transform_5, window_bounds = array<i64: 1, 1>}, {transform_indices = @transform_6, window_bounds = array<i64: 1, 1>}]} {
    %c0_i32 = arith.constant 0 : i32
    %0 = arith.cmpi eq, %arg0, %c0_i32 : i32
    %1 = arith.extui %0 : i1 to i32
    %c0_i32_0 = arith.constant 0 : i32
    %2 = arith.cmpi ne, %1, %c0_i32_0 : i32
    scf.if %2 {
      %cst_10 = arith.constant 0.000000e+00 : f32
      %c0_11 = arith.constant 0 : index
      %21 = memref.load %arg8[%c0_11] : memref<1xf32, #tpu.memory_space<smem>>
      memref.store %cst_10, %arg8[%c0_11] : memref<1xf32, #tpu.memory_space<smem>>
    } else {
    }
    %c0 = arith.constant 0 : index
    %c0_1 = arith.constant 0 : index
    %3 = vector.load %arg1[%c0, %c0_1] : memref<16x16xf32, #tpu.memory_space<vmem>>, vector<16x16xf32>
    %c0_2 = arith.constant 0 : index
    %c0_3 = arith.constant 0 : index
    %4 = vector.load %arg2[%c0_2, %c0_3] : memref<16x16xf32, #tpu.memory_space<vmem>>, vector<16x16xf32>
    %5 = arith.subf %4, %3 : vector<16x16xf32>
    %c0_4 = arith.constant 0 : index
    %c0_5 = arith.constant 0 : index
    %6 = vector.load %arg3[%c0_4, %c0_5] : memref<16x16xf32, #tpu.memory_space<vmem>>, vector<16x16xf32>
    %7 = arith.subf %6, %3 : vector<16x16xf32>
    %8 = arith.mulf %5, %5 : vector<16x16xf32>
    %9 = arith.mulf %7, %7 : vector<16x16xf32>
    %10 = arith.addf %8, %9 : vector<16x16xf32>
    %c0_6 = arith.constant 0 : index
    %11 = memref.load %arg8[%c0_6] : memref<1xf32, #tpu.memory_space<smem>>
    %12 = vector.shape_cast %10 : vector<16x16xf32> to vector<1x16x16xf32>
    %cst = arith.constant dense<0.000000e+00> : vector<1xf32>
    %13 = vector.multi_reduction <add>, %12, %cst [1, 2] : vector<1x16x16xf32> to vector<1xf32>
    %14 = vector.shape_cast %13 : vector<1xf32> to vector<1x1x1xf32>
    %15 = vector.extract %14[0, 0, 0] : f32 from vector<1x1x1xf32>
    %16 = arith.addf %11, %15 : f32
    %c0_7 = arith.constant 0 : index
    %17 = memref.load %arg8[%c0_7] : memref<1xf32, #tpu.memory_space<smem>>
    memref.store %16, %arg8[%c0_7] : memref<1xf32, #tpu.memory_space<smem>>
    %c0_i32_8 = arith.constant 0 : i32
    %18 = arith.cmpi eq, %arg0, %c0_i32_8 : i32
    %19 = arith.extui %18 : i1 to i32
    %c0_i32_9 = arith.constant 0 : i32
    %20 = arith.cmpi ne, %19, %c0_i32_9 : i32
    scf.if %20 {
      %c0_10 = arith.constant 0 : index
      %21 = memref.load %arg8[%c0_10] : memref<1xf32, #tpu.memory_space<smem>>
      %cst_11 = arith.constant 3.906250e-03 : f32
      %22 = arith.mulf %21, %cst_11 : f32
      %c0_12 = arith.constant 0 : index
      %c0_13 = arith.constant 0 : index
      %23 = memref.load %arg6[%c0_12, %c0_13] : memref<1x1xf32, #tpu.memory_space<smem>>
      memref.store %22, %arg6[%c0_12, %c0_13] : memref<1x1xf32, #tpu.memory_space<smem>>
      %c0_14 = arith.constant 0 : index
      %c0_15 = arith.constant 0 : index
      %24 = vector.load %arg4[%c0_14, %c0_15] : memref<1x16xf32, #tpu.memory_space<vmem>>, vector<1x16xf32>
      %c0_16 = arith.constant 0 : index
      %c0_17 = arith.constant 0 : index
      %25 = vector.load %arg5[%c0_16, %c0_17] : memref<1x16xf32, #tpu.memory_space<vmem>>, vector<1x16xf32>
      %cst_18 = arith.constant 0.000000e+00 : f32
      %26 = vector.broadcast %cst_18 : f32 to vector<1x16xf32>
      %27 = arith.maximumf %24, %26 : vector<1x16xf32>
      %28 = arith.mulf %24, %25 : vector<1x16xf32>
      %29 = arith.subf %27, %28 : vector<1x16xf32>
      %30 = math.absf %24 : vector<1x16xf32>
      %cst_19 = arith.constant 0.000000e+00 : f32
      %31 = vector.broadcast %cst_19 : f32 to vector<1x16xf32>
      %32 = arith.subf %31, %30 : vector<1x16xf32>
      %33 = math.exp %32 : vector<1x16xf32>
      %34 = math.log1p %33 : vector<1x16xf32>
      %35 = arith.addf %29, %34 : vector<1x16xf32>
      %36 = vector.shape_cast %35 : vector<1x16xf32> to vector<1x1x16xf32>
      %cst_20 = arith.constant dense<0.000000e+00> : vector<1xf32>
      %37 = vector.multi_reduction <add>, %36, %cst_20 [1, 2] : vector<1x1x16xf32> to vector<1xf32>
      %38 = vector.shape_cast %37 : vector<1xf32> to vector<1x1x1xf32>
      %39 = vector.extract %38[0, 0, 0] : f32 from vector<1x1x1xf32>
      %cst_21 = arith.constant 6.250000e-02 : f32
      %40 = arith.mulf %39, %cst_21 : f32
      %c0_22 = arith.constant 0 : index
      %c0_23 = arith.constant 0 : index
      %41 = memref.load %arg7[%c0_22, %c0_23] : memref<1x1xf32, #tpu.memory_space<smem>>
      memref.store %40, %arg7[%c0_22, %c0_23] : memref<1x1xf32, #tpu.memory_space<smem>>
    } else {
    }
    return
  }
  func.func @transform_0(%arg0: i32) -> (i32, i32) {
    %c0_i32 = arith.constant 0 : i32
    %c0_i32_0 = arith.constant 0 : i32
    return %arg0, %c0_i32 : i32, i32
  }
  func.func @transform_1(%arg0: i32) -> (i32, i32) {
    %c0_i32 = arith.constant 0 : i32
    %c0_i32_0 = arith.constant 0 : i32
    return %arg0, %c0_i32 : i32, i32
  }
  func.func @transform_2(%arg0: i32) -> (i32, i32) {
    %c0_i32 = arith.constant 0 : i32
    %c0_i32_0 = arith.constant 0 : i32
    return %arg0, %c0_i32 : i32, i32
  }
  func.func @transform_3(%arg0: i32) -> (i32, i32) {
    %c0_i32 = arith.constant 0 : i32
    %c0_i32_0 = arith.constant 0 : i32
    %c0_i32_1 = arith.constant 0 : i32
    return %c0_i32, %c0_i32_0 : i32, i32
  }
  func.func @transform_4(%arg0: i32) -> (i32, i32) {
    %c0_i32 = arith.constant 0 : i32
    %c0_i32_0 = arith.constant 0 : i32
    %c0_i32_1 = arith.constant 0 : i32
    return %c0_i32, %c0_i32_0 : i32, i32
  }
  func.func @transform_5(%arg0: i32) -> (i32, i32) {
    %c0_i32 = arith.constant 0 : i32
    %c0_i32_0 = arith.constant 0 : i32
    %c0_i32_1 = arith.constant 0 : i32
    return %c0_i32, %c0_i32_0 : i32, i32
  }
  func.func @transform_6(%arg0: i32) -> (i32, i32) {
    %c0_i32 = arith.constant 0 : i32
    %c0_i32_0 = arith.constant 0 : i32
    %c0_i32_1 = arith.constant 0 : i32
    return %c0_i32, %c0_i32_0 : i32, i32
  }
}

</mosaic_0001>

<bundles_post_ra>
// kernel: tpu_custom_call.1
= control target key start
LH: loop header
LB: loop body
LE: loop exit
PB: predicated region body
PF: predicated region fallthrough
CT: control target
= control target key end

     0   :  { %12 = vsyncpa [#allocation4], 0  ;;  %s333_s0 = inlined_call_operand.hbm [shape: f32[16,16], index: 0, kind: input, shape index: {}]   ;;  %s334_s1 = inlined_call_operand.hbm [shape: f32[16,16], index: 1, kind: input, shape index: {}]   ;;  %s335_s2 = inlined_call_operand.hbm [shape: f32[16,16], index: 2, kind: input, shape index: {}]   ;;  %s336_s3 = inlined_call_operand.vmem [shape: f32[1,16], index: 3, kind: input, shape index: {}]   ;;  %s337_s4 = inlined_call_operand.vmem [shape: f32[1,16], index: 4, kind: input, shape index: {}]   ;;  %s338_s5 = inlined_call_operand.hbm [shape: f32[1,1], index: 5, kind: output, shape index: {0}]   ;;  %s339_s6 = inlined_call_operand.hbm [shape: f32[1,1], index: 6, kind: output, shape index: {1}]  }
   0x1   :  { %13 = vsyncpa [#allocation7], 0 }
   0x2   :  { %14 = vsyncpa [#allocation5], 0 }
   0x3   :  { %15 = vsyncpa [#allocation11], 0  ;;  %s270_s21 = smov [#allocation6]   ;;  %s271_s23 = smov [#allocation3]  }
   0x4   :  { %s33_s22 = sshll.u32 %s270_s21, 4  ;;  %s21_s24 = sshll.u32 %s271_s23, 4  ;;  %s34_s22 = int_to_ptr.vmem [resolvable:$true] %s33_s22  ;;  %s22_s24 = int_to_ptr.vmem [resolvable:$true] %s21_s24 }
   0x5   :  { %s194_s25 = scalar_lea.vmem %s34_s22, 256  ;;  %p199_p1 = scmp.lt.s32.totalorder %s34_s22, %s34_s22 }
   0x6   :  { %p195_p0 = scmp.ne.s32.totalorder %s34_s22, %s194_s25  ;;  %p200_p2 = scmp.lt.s32.totalorder %s194_s25, %s194_s25 }
   0x8   :  { %p201_p3 = por %p200_p2, %p199_p1 }
   0xa   :  { %p202_p4 = pnand %p201_p3, %p195_p0 }
   0xc   :  { %205 = shalt.err (!%p202_p4)
}
   0xd   :  { %s272_s26 = smov 128   ;;  %s273_s27 = smov 8  }
   0xe   :  { %39 = dma.hbm_to_vmem [thread:$0]  %s334_s1, 256, %s34_s22, [#allocation7], %s272_s26, %s272_s26, %s273_s27  }
   0xf   :  { %s214_s30 = scalar_lea.vmem %s22_s24, 256  ;;  %p219_p6 = scmp.lt.s32.totalorder %s22_s24, %s22_s24 }
  0x10   :  { %p215_p5 = scmp.ne.s32.totalorder %s22_s24, %s214_s30  ;;  %p220_p7 = scmp.lt.s32.totalorder %s214_s30, %s214_s30 }
  0x12   :  { %p221_p8 = por %p220_p7, %p219_p6 }
  0x14   :  { %p222_p9 = pnand %p221_p8, %p215_p5 }
  0x16   :  { %225 = shalt.err (!%p222_p9)
}
  0x17   :  { %27 = dma.hbm_to_vmem [thread:$0]  %s333_s0, 256, %s22_s24, [#allocation4], %s272_s26, %s272_s26, %s273_s27  }
  0x18   :  { %s274_s9 = smov [#allocation8]  }
  0x19   :  { %s45_s10 = sshll.u32 %s274_s9, 4  ;;  %s46_s10 = int_to_ptr.vmem [resolvable:$true] %s45_s10 }
  0x1a   :  { %s234_s11 = scalar_lea.vmem %s46_s10, 256  ;;  %p239_p11 = scmp.lt.s32.totalorder %s46_s10, %s46_s10 }
  0x1b   :  { %p235_p10 = scmp.ne.s32.totalorder %s46_s10, %s234_s11  ;;  %p240_p12 = scmp.lt.s32.totalorder %s234_s11, %s234_s11 }
  0x1d   :  { %p241_p13 = por %p240_p12, %p239_p11 }
  0x1f   :  { %p242_p0 = pnand %p241_p13, %p235_p10 }
  0x21   :  { %245 = shalt.err (!%p242_p0)
}
  0x22   :  { %51 = dma.hbm_to_vmem [thread:$0]  %s335_s2, 256, %s46_s10, [#allocation7], %s272_s26, %s272_s26, %s273_s27  }
  0x23   :  { %262 = dma.done.wait [#allocation4], 256  }
  0x24   :  { %263 = vsyncadd [#allocation4], 4294967040 }
  0x25   :  { %264 = dma.done.wait [#allocation7], 512  }
  0x26   :  { %265 = vsyncadd [#allocation7], 4294966784  ;;  %v71_v0 = vld [vmem:[#allocation3] sm:$0xff]  ;;  %v72_v1 = vld [vmem:[#allocation3 + $0x8] sm:$0xff]  ;;  %vm88_vm0 = vcmask 130048   ;;  %vm130_vm2 = vcmask 122880  }
  0x27   :  { %v73_v2 = vld [vmem:[#allocation6] sm:$0xff]  ;;  %v74_v3 = vld [vmem:[#allocation6 + $0x8] sm:$0xff]  ;;  %v77_v5 = vld [vmem:[#allocation8] sm:$0xff]  ;;  %s275_s15 = smov [#allocation9]   ;;  %s276_s20 = smov [#allocation10]  }
  0x28   :  { %v75_v4 = vsub.f32 %v73_v2, %v71_v0  ;;  %v78_v6 = vld [vmem:[#allocation8 + $0x8] sm:$0xff]  ;;  %v76_v7 = vsub.f32 %v74_v3, %v72_v1  ;;  %v79_v8 = vsub.f32 %v77_v5, %v71_v0  ;;  %v111_v10 = vld [vmem:[%s336_s3] sm:$0x1] }
  0x29   :  { %v80_v9 = vsub.f32 %v78_v6, %v72_v1  ;;  %v116_v12 = vand.u32 2147483647, %v111_v10  ;;  %v112_v26 = vld [vmem:[%s337_s4] sm:$0x1]  ;;  %v113_v28 = vmax.f32 %v111_v10, 0.0 }
  0x2a   :  { %v81_v11 = vmul.f32 %v75_v4, %v75_v4  ;;  %v82_v13 = vmul.f32 %v76_v7, %v76_v7  ;;  %v83_v14 = vmul.f32 %v79_v8, %v79_v8  ;;  %v114_v29 = vmul.f32 %v112_v26, %v111_v10 }
  0x2b   :  { %v84_v15 = vmul.f32 %v80_v9, %v80_v9  ;;  %v117_v16 = vsub.f32 0.0, %v116_v12 }
  0x2c   :  { %v85_v17 = vadd.f32 %v83_v14, %v81_v11  ;;  %v115_v33 = vsub.f32 %v113_v28, %v114_v29 }
  0x2d   :  { %v86_v18 = vadd.f32 %v84_v15, %v82_v13  ;;  %v118_v19 = vmul.f32 1.442695, %v117_v16 }
  0x2e   :  { %v89_v20 = vsel %vm88_vm0, %v85_v17, 0.0 }
  0x2f   :  { %v90_v21 = vsel %vm88_vm0, %v86_v18, 0.0  ;;  %182 = vpow2.f32 %v118_v19 }
  0x30   :  { %v91_v22 = vadd.f32 %v90_v21, %v89_v20 }
  0x32   :  { %92 = vadd.xlane.f32.xlu0 %v91_v22 }
  0x3c   :  { %v183_v23 = vpop.eup %182 }
  0x3d   :  { %v120_v24 = vadd.f32 1.0, %v183_v23  ;;  %v123_v25 = vmul.f32 -0.5, %v183_v23  ;;  %v126_v30 = vand.u32 2147483647, %v183_v23 }
  0x3f   :  { %184 = vlog2.f32 %v120_v24  ;;  %v124_v27 = vadd.f32 1.0, %v123_v25  ;;  %vm127_vm1 = vcmp.lt.f32.partialorder %v126_v30, 0.0004427343 }
  0x41   :  { %v125_v31 = vmul.f32 %v183_v23, %v124_v27 }
  0x4c   :  { %v185_v32 = vpop.eup %184 }
  0x4d   :  { %v122_v34 = vmul.f32 0.6931472, %v185_v32 }
  0x4f   :  { %v128_v35 = vsel %vm127_vm1, %v125_v31, %v122_v34 }
  0x50   :  { %v129_v36 = vadd.f32 %v128_v35, %v115_v33 }
  0x52   :  { %v131_v37 = vsel %vm130_vm2, %v129_v36, 0.0 }
  0x53   :  { %132 = vadd.xlane.f32.xlu0 %v131_v37 }
  0xbb   :  { %v93_v38 = vpop.xlane.xlu0 %92 }
  0xbc   :  { %v94_v39 = vrot.slane %v93_v38, 4 }
  0xbe   :  { %v95_v40 = vadd.f32 %v94_v39, %v93_v38 }
  0xc0   :  { %v96_v41 = vrot.slane %v95_v40, 2 }
  0xc2   :  { %v97_v42 = vadd.f32 %v96_v41, %v95_v40 }
  0xc4   :  { %v98_v43 = vrot.slane %v97_v42, 1 }
  0xc6   :  { %v99_v44 = vadd.f32 %v98_v43, %v97_v42 }
  0xc8   :  { %171 = vpush %v99_v44 }
  0xdc   :  { %v133_v45 = vpop.xlane.xlu0 %132 }
  0xdd   :  { %v134_v46 = vrot.slane %v133_v45, 4 }
  0xdf   :  { %v135_v47 = vadd.f32 %v134_v46, %v133_v45 }
  0xe1   :  { %v136_v48 = vrot.slane %v135_v47, 2 }
  0xe3   :  { %v137_v49 = vadd.f32 %v136_v48, %v135_v47 }
  0xe5   :  { %v138_v50 = vrot.slane %v137_v49, 1 }
  0xe7   :  { %v139_v51 = vadd.f32 %v138_v50, %v137_v49 }
  0xe9   :  { %173 = vpush %v139_v51 }
  0xf9   :  { %s172_s4 = spop %171 }
  0xfa   :  { %s108_s14 = smul.f32 0.00390625, %s172_s4 }
  0xfc   :  { %110 = sst [smem:[#allocation9]] %s108_s14 }
  0xfd   :  { %151 = dma.smem_to_hbm %s275_s15, 16, %s338_s5, [#allocation5]  }
 0x11a   :  { %s174_s18 = spop %173 }
 0x11b   :  { %s141_s19 = smul.f32 0.0625, %s174_s18 }
 0x11d   :  { %143 = sst [smem:[#allocation10]] %s141_s19 }
 0x11e   :  { %159 = dma.smem_to_hbm %s276_s20, 16, %s339_s6, [#allocation11]  }
 0x11f   :  { %266 = dma.done.wait [#allocation5], 16  }
 0x120   :  { %267 = vsyncadd [#allocation5], 4294967280 }
 0x121   :  { %268 = dma.done.wait [#allocation11], 16  }
 0x122   :  { %269 = vsyncadd [#allocation11], 4294967280 }
 0x123   :  { %166 = sfence }
 0x124   :  { %167 = vsyncpa [#allocation4], 1 }
 0x125   :  { %168 = vsyncpa [#allocation7], 1 }
 0x126   :  { %169 = vsyncpa [#allocation5], 1 }
 0x127   :  { %170 = vsyncpa [#allocation11], 1 }

</bundles_post_ra>
